<compile_context>
chip_gen: v7x
topology: tpu7x:2x2x1
jax: 0.10.0
libtpu: 0.0.40
codegen_flags: <defaults>
</compile_context>

<pallas_src>
import math
import functools

import jax
import jax.numpy as jnp
from jax.experimental import pallas as pl
from jax.experimental.pallas import tpu as pltpu


def _pe_kernel(pos_ref, const_ref, out_ref, *, d_model):
    # pos_ref:   [R, fold]  f32   (fold positions per folded output row)
    # const_ref: [2, W]     f32   row 0: per-lane frequency (div_term tiled),
    #                             row 1: 1.0 on even channels, 0.0 on odd
    # out_ref:   [R, W]     f32   lane-dense folded output rows
    pos = pos_ref[...]                     # (R, fold)
    div = const_ref[0:1, :]                # (1, W)
    is_sin = const_ref[1:2, :] > 0.5       # (1, W) bool
    fold = pos.shape[1]
    if fold == 1:
        angle = pos * div                  # (R,1)*(1,W) broadcast, no repeat
    else:
        # Lane-repeat positions once for the whole block, then one full-width
        # multiply forms every angle (full 128-lane utilization).
        angle = jnp.repeat(pos, d_model, axis=1) * div
    out_ref[...] = jnp.where(is_sin, jnp.sin(angle), jnp.cos(angle))


def _choose_fold(d_model: int, n_pos: int) -> int:
    """Positions packed per folded output row.

    W = fold * d_model must be a multiple of 128 (unmasked full-lane stores).
    Prefer a fold that divides n_pos (no padded tail -> no post-kernel slice
    copy) and a lane width W in the 512..2048 sweet spot.
    """
    base = math.lcm(d_model, 128) // d_model
    cands = [base]
    k = 2
    while k * base * d_model <= 2048:
        cands.append(k * base)
        k += 1
    div_cands = [f for f in cands if n_pos % f == 0]
    if div_cands:
        return max(div_cands)
    # No aligned fold divides n_pos: take the widest W <= 1024; the tail gets
    # padded and sliced off after the kernel.
    best = base
    for f in cands:
        if f * d_model <= 1024 and f > best:
            best = f
    return best


@functools.partial(jax.jit, static_argnums=(1,))
def positional_encoder(position, d_model: int):
    """position: [B, L] float array -> pe: [B, L, d_model] float32."""
    B, L = position.shape
    N = B * L

    # div_term exactly as the PyTorch buffer; expand to one value per channel
    # (channels 2j and 2j+1 share div_term[j]) and build the parity mask.
    # TODO(synk): odd d_model makes the original PyTorch forward shape-error;
    # here it is handled self-consistently via the mask.
    div_term = jnp.exp(
        jnp.arange(0, d_model, 2, dtype=jnp.float32)
        * (-math.log(10000.0) / d_model)
    )
    div_full = jnp.repeat(div_term, 2)[:d_model]                      # (d,)
    even = ((jnp.arange(d_model) % 2) == 0).astype(jnp.float32)       # (d,)

    fold = _choose_fold(d_model, N)
    W = fold * d_model                     # lane width of a folded output row
    M = -(-N // fold)                      # folded rows (ceil)

    # Single merged constant input: [div | parity] tiled to the folded width.
    const = jnp.stack([jnp.tile(div_full, fold), jnp.tile(even, fold)], axis=0)
    const = const.astype(jnp.float32)      # (2, W)

    pos_flat = position.astype(jnp.float32).reshape(-1)
    if M * fold != N:                      # pad only the tiny position vector
        pos_flat = jnp.pad(pos_flat, (0, M * fold - N))
    pos2d = pos_flat.reshape(M, fold)

    # ---- Row-tile / grid selection -----------------------------------------
    # Budget counts both the output row (W*4 B) and the lane-padded position
    # row (512 B in VMEM regardless of fold).  Target ~2 MiB blocks, but keep
    # >=2 grid steps (v7x dual-TC) and ~8 steps for large inputs (pipeline
    # overlap), without letting blocks shrink much below ~0.5 MiB.
    if M <= 8:
        R = M                              # full (tiny) array, single step
    else:
        row_bytes = W * 4 + 512
        r_vmem = max(8, ((2 * 1024 * 1024) // row_bytes) // 8 * 8)
        r_floor = max(8, ((512 * 1024) // row_bytes) // 8 * 8)
        r8 = ((-(-M // 8) + 7) // 8) * 8   # rows/step for ~8 steps
        r2 = ((-(-M // 2) + 7) // 8) * 8   # rows/step for ~2 steps
        R = min(r_vmem, max(r8, min(r_floor, r2)))
    grid = (-(-M // R),)                   # Pallas masks the ragged last block

    cost = pl.CostEstimate(
        flops=int(3 * M * W),
        transcendentals=int(2 * M * W),
        bytes_accessed=int(4 * (M * fold + 2 * W + M * W)),
    )

    kernel = functools.partial(_pe_kernel, d_model=d_model)

    out = pl.pallas_call(
        kernel,
        out_shape=jax.ShapeDtypeStruct((M, W), jnp.float32),
        grid_spec=pl.GridSpec(
            grid=grid,
            in_specs=[
                pl.BlockSpec((R, fold), lambda i: (i, 0)),   # positions
                pl.BlockSpec((2, W), lambda i: (0, 0)),      # div + parity
            ],
            out_specs=pl.BlockSpec((R, W), lambda i: (i, 0)),
        ),
        compiler_params=pltpu.CompilerParams(
            dimension_semantics=("parallel",),
        ),
        cost_estimate=cost,
    )(pos2d, const)

    # (M, fold*d_model) row-major == (M*fold, d_model) row-major: free reshape.
    flat = out.reshape(M * fold, d_model)
    if M * fold != N:
        # TODO(synk): this tail slice materializes a copy; it is only hit when
        # no 128-aligned fold divides N (e.g. odd N with even d_model).
        flat = flat[:N]
    return flat.reshape(B, L, d_model)


def _reference(position, d_model):
    # Pure-JAX reference mirroring the PyTorch forward.
    B, L = position.shape
    div_term = jnp.exp(
        jnp.arange(0, d_model, 2, dtype=jnp.float32)
        * (-math.log(10000.0) / d_model)
    )
    pos = position.astype(jnp.float32)[..., None]        # [B, L, 1]
    pe = jnp.zeros((B, L, d_model), dtype=jnp.float32)
    pe = pe.at[:, :, 0::2].set(jnp.sin(pos * div_term))
    pe = pe.at[:, :, 1::2].set(jnp.cos(pos * div_term))
    return pe


if __name__ == "__main__":
    # 1) Primary check: B=2, L=8, d_model=32 (fold>1, d_model<128 path).
    B, L, d_model = 2, 8, 32
    position = jax.random.uniform(
        jax.random.PRNGKey(0), (B, L), dtype=jnp.float32,
        minval=0.0, maxval=100.0,
    )
    pe = jax.block_until_ready(positional_encoder(position, d_model))
    ref = _reference(position, d_model)
    assert pe.shape == (B, L, d_model)
    assert pe.dtype == jnp.float32
    assert jnp.allclose(pe, ref, atol=5e-5, rtol=1e-5)

    # 2) Ragged-N path (no 128-aligned fold divides N=15), d_model=64.
    pos2 = jax.random.uniform(
        jax.random.PRNGKey(1), (3, 5), dtype=jnp.float32,
        minval=0.0, maxval=100.0,
    )
    pe2 = jax.block_until_ready(positional_encoder(pos2, 64))
    assert jnp.allclose(pe2, _reference(pos2, 64), atol=5e-5, rtol=1e-5)

    # 3) d_model multiple of 128 path.
    pos3 = jax.random.uniform(
        jax.random.PRNGKey(2), (2, 16), dtype=jnp.float32,
        minval=0.0, maxval=100.0,
    )
    pe3 = jax.block_until_ready(positional_encoder(pos3, 128))
    assert jnp.allclose(pe3, _reference(pos3, 128), atol=5e-5, rtol=1e-5)

    # 4) Multi-step grid path (R < M, 2 grid steps).
    pos4 = jax.random.uniform(
        jax.random.PRNGKey(3), (4, 256), dtype=jnp.float32,
        minval=0.0, maxval=100.0,
    )
    pe4 = jax.block_until_ready(positional_encoder(pos4, 32))
    assert jnp.allclose(pe4, _reference(pos4, 32), atol=5e-5, rtol=1e-5)

    print("KERNEL_OK")
</pallas_src>

<mosaic_0001>
module attributes {stable_mosaic.version = 11 : i64} {
  func.func @_pe_kernel(%arg0: i32, %arg1: memref<1x16xf32, #tpu.memory_space<vmem>>, %arg2: memref<2x512xf32, #tpu.memory_space<vmem>>, %arg3: memref<1x512xf32, #tpu.memory_space<vmem>>) attributes {dimension_semantics = [#tpu.dimension_semantics<parallel>], iteration_bounds = array<i64: 1>, scalar_prefetch = 0 : i64, scratch_operands = 0 : i64, tpu.core_type = #tpu.core_type<tc>, window_params = [{transform_indices = @transform_0, window_bounds = array<i64: 1, 16>}, {pipeline_mode = #tpu.pipeline_mode<synchronous>, transform_indices = @transform_1, window_bounds = array<i64: 2, 512>}, {transform_indices = @transform_2, window_bounds = array<i64: 1, 512>}]} {
    %c0 = arith.constant 0 : index
    %c0_0 = arith.constant 0 : index
    %0 = vector.load %arg1[%c0, %c0_0] : memref<1x16xf32, #tpu.memory_space<vmem>>, vector<1x16xf32>
    %c0_1 = arith.constant 0 : index
    %c0_2 = arith.constant 0 : index
    %1 = vector.load %arg2[%c0_1, %c0_2] : memref<2x512xf32, #tpu.memory_space<vmem>>, vector<1x512xf32>
    %c1 = arith.constant 1 : index
    %c0_3 = arith.constant 0 : index
    %2 = vector.load %arg2[%c1, %c0_3] : memref<2x512xf32, #tpu.memory_space<vmem>>, vector<1x512xf32>
    %cst = arith.constant 5.000000e-01 : f32
    %3 = vector.broadcast %cst : f32 to vector<1x512xf32>
    %4 = arith.cmpf ogt, %2, %3 : vector<1x512xf32>
    %5 = vector.shape_cast %0 : vector<1x16xf32> to vector<1x16x1xf32>
    %6 = vector.broadcast %5 : vector<1x16x1xf32> to vector<1x16x32xf32>
    %7 = vector.shape_cast %6 : vector<1x16x32xf32> to vector<1x512xf32>
    %8 = arith.mulf %7, %1 : vector<1x512xf32>
    %9 = math.sin %8 : vector<1x512xf32>
    %10 = math.cos %8 : vector<1x512xf32>
    %11 = arith.select %4, %9, %10 : vector<1x512xi1>, vector<1x512xf32>
    %c0_4 = arith.constant 0 : index
    %c0_5 = arith.constant 0 : index
    %12 = vector.load %arg3[%c0_4, %c0_5] : memref<1x512xf32, #tpu.memory_space<vmem>>, vector<1x512xf32>
    tpu.vector_store %arg3[%c0_4, %c0_5], %11 {strides = array<i32>} : memref<1x512xf32, #tpu.memory_space<vmem>>, vector<1x512xf32>,
    return
  }
  func.func @transform_0(%arg0: i32) -> (i32, i32) {
    %c0_i32 = arith.constant 0 : i32
    %c0_i32_0 = arith.constant 0 : i32
    return %arg0, %c0_i32 : i32, i32
  }
  func.func @transform_1(%arg0: i32) -> (i32, i32) {
    %c0_i32 = arith.constant 0 : i32
    %c0_i32_0 = arith.constant 0 : i32
    %c0_i32_1 = arith.constant 0 : i32
    return %c0_i32, %c0_i32_0 : i32, i32
  }
  func.func @transform_2(%arg0: i32) -> (i32, i32) {
    %c0_i32 = arith.constant 0 : i32
    %c0_i32_0 = arith.constant 0 : i32
    return %arg0, %c0_i32 : i32, i32
  }
}

</mosaic_0001>

<bundles_post_ra>
// kernel: tile.11
= control target key start
LH: loop header
LB: loop body
LE: loop exit
PB: predicated region body
PF: predicated region fallthrough
CT: control target
= control target key end

     0   :  { %s28_s0 = inlined_call_operand.vmem [shape: f32[32], index: 0, kind: input, shape index: {}]   ;;  %s29_s1 = inlined_call_operand.vmem [shape: f32[16,32], index: 1, kind: output, shape index: {}]  }
   0x1   :  { %v4_v0 = vld [vmem:[%s28_s0] ss:$0 sm:$0xff] }
   0x2   :  { %5 = vst [vmem:[%s29_s1] sm:$0xff] %v4_v0  ;;  %8 = vst [vmem:[%s29_s1 + $0x8] sm:$0xff] %v4_v0 }

// kernel: tile.10
= control target key start
LH: loop header
LB: loop body
LE: loop exit
PB: predicated region body
PF: predicated region fallthrough
CT: control target
= control target key end

     0   :  { %s131_s10 = smov 30   ;;  %s132_s11 = smov 26   ;;  %vm3_vm0 = vcmask 15360   ;;  %vm9_vm1 = vcmask 261360   ;;  %vm15_vm2 = vcmask 244960   ;;  %vm21_vm3 = vcmask 228560   ;;  %s207_s0 = inlined_call_operand.vmem [shape: f32[16,2], index: 0, kind: input, shape index: {}]   ;;  %s208_s1 = inlined_call_operand.vmem [shape: f32[32], index: 1, kind: output, shape index: {}]  }
   0x1   :  { %v101_v0 = vld [vmem:[%s207_s0 + $0xf] sm:$0x1]   ;;  %v103_v1 = vld [vmem:[%s207_s0 + $0xd] sm:$0x1]   ;;  %v102_v2 = vld [vmem:[%s207_s0 + $0xe] sm:$0x1]  }
   0x2   :  { %7 = vrot.lane.b32.xlu0 %v101_v0, %s131_s10  ;;  %19 = vrot.lane.b32.xlu1 %v103_v1, %s132_s11  ;;  %v104_v3 = vld [vmem:[%s207_s0 + $0xc] sm:$0x1]   ;;  %s133_s16 = smov 28   ;;  %s134_s17 = smov 24   ;;  %v105_v4 = vld [vmem:[%s207_s0 + $0xb] sm:$0x1]  }
   0x3   :  { %v106_v5 = vld [vmem:[%s207_s0 + $0xa] sm:$0x1]   ;;  %v2_v6 = vld [vmem:[%s207_s0] sm:$0x1]   ;;  %s135_s24 = smov 22   ;;  %s136_s25 = smov 20  }
   0x4   :  { %4 = vst.msk [vmem:[#allocation0] sm:$0x1] %vm3_vm0, %v2_v6   ;;  %v107_v7 = vld [vmem:[%s207_s0 + $0x9] sm:$0x1]   ;;  %v108_v8 = vld [vmem:[%s207_s0 + $0x8] sm:$0x1]  }
   0x5   :  { %s137_s30 = smov 18   ;;  %s138_s2 = smov 16   ;;  %v109_v9 = vld [vmem:[%s207_s0 + $0x7] sm:$0x1]   ;;  %v110_v10 = vld [vmem:[%s207_s0 + $0x6] sm:$0x1]  }
   0x6   :  { %13 = vrot.lane.b32.xlu0 %v102_v2, %s133_s16  ;;  %25 = vrot.lane.b32.xlu1 %v104_v3, %s134_s17  ;;  %s139_s7 = smov 14   ;;  %s140_s8 = smov 12   ;;  %v111_v11 = vld [vmem:[%s207_s0 + $0x5] sm:$0x1]   ;;  %v112_v12 = vld [vmem:[%s207_s0 + $0x4] sm:$0x1]  }
   0x7   :  { %s141_s13 = smov 10   ;;  %s142_s14 = smov 8   ;;  %v113_v13 = vld [vmem:[%s207_s0 + $0x3] sm:$0x1]   ;;  %v114_v14 = vld [vmem:[%s207_s0 + $0x2] sm:$0x1]  }
   0x8   :  { %s143_s19 = smov 6   ;;  %s144_s20 = smov 4   ;;  %v115_v15 = vld [vmem:[%s207_s0 + $0x1] sm:$0x1]   ;;  %vm27_vm4 = vcmask 212160   ;;  %vm33_vm5 = vcmask 195760  }
   0x9   :  { %s145_s0 = smov 2   ;;  %vm39_vm6 = vcmask 179360   ;;  %vm45_vm7 = vcmask 162960   ;;  %vm51_vm8 = vcmask 146560   ;;  %vm57_vm9 = vcmask 130160  }
   0xa   :  { %31 = vrot.lane.b32.xlu0 %v105_v4, %s135_s24  ;;  %37 = vrot.lane.b32.xlu1 %v106_v5, %s136_s25  ;;  %vm63_vm10 = vcmask 113760   ;;  %vm69_vm11 = vcmask 97360   ;;  %vm75_vm12 = vcmask 80960   ;;  %vm81_vm13 = vcmask 64560  }
   0xb   :  { %vm87_vm14 = vcmask 48160   ;;  %vm93_vm15 = vcmask 31760  }
   0xe   :  { %43 = vrot.lane.b32.xlu0 %v107_v7, %s137_s30  ;;  %49 = vrot.lane.b32.xlu1 %v108_v8, %s138_s2 }
  0x12   :  { %55 = vrot.lane.b32.xlu0 %v109_v9, %s139_s7  ;;  %61 = vrot.lane.b32.xlu1 %v110_v10, %s140_s8 }
  0x16   :  { %67 = vrot.lane.b32.xlu0 %v111_v11, %s141_s13  ;;  %73 = vrot.lane.b32.xlu1 %v112_v12, %s142_s14 }
  0x1a   :  { %79 = vrot.lane.b32.xlu0 %v113_v13, %s143_s19  ;;  %85 = vrot.lane.b32.xlu1 %v114_v14, %s144_s20 }
  0x1e   :  { %91 = vrot.lane.b32.xlu0 %v115_v15, %s145_s0 }
  0x74   :  { %v8_v16 = vpop.permute.xlu0 %7   ;;  %v20_v17 = vpop.permute.xlu1 %19  }
  0x75   :  { %10 = vst.msk [vmem:[#allocation0] sm:$0x1] %vm9_vm1, %v8_v16  }
  0x78   :  { %v14_v18 = vpop.permute.xlu0 %13   ;;  %v26_v19 = vpop.permute.xlu1 %25  }
  0x79   :  { %16 = vst.msk [vmem:[#allocation0] sm:$0x1] %vm15_vm2, %v14_v18  }
  0x7a   :  { %22 = vst.msk [vmem:[#allocation0] sm:$0x1] %vm21_vm3, %v20_v17  }
  0x7b   :  { %28 = vst.msk [vmem:[#allocation0] sm:$0x1] %vm27_vm4, %v26_v19  }
  0x7c   :  { %v32_v20 = vpop.permute.xlu0 %31   ;;  %v38_v21 = vpop.permute.xlu1 %37  }
  0x7d   :  { %34 = vst.msk [vmem:[#allocation0] sm:$0x1] %vm33_vm5, %v32_v20  }
  0x7e   :  { %40 = vst.msk [vmem:[#allocation0] sm:$0x1] %vm39_vm6, %v38_v21  }
  0x80   :  { %v44_v22 = vpop.permute.xlu0 %43   ;;  %v50_v23 = vpop.permute.xlu1 %49  }
  0x81   :  { %46 = vst.msk [vmem:[#allocation0] sm:$0x1] %vm45_vm7, %v44_v22  }
  0x82   :  { %52 = vst.msk [vmem:[#allocation0] sm:$0x1] %vm51_vm8, %v50_v23  }
  0x84   :  { %v56_v24 = vpop.permute.xlu0 %55   ;;  %v62_v25 = vpop.permute.xlu1 %61  }
  0x85   :  { %58 = vst.msk [vmem:[#allocation0] sm:$0x1] %vm57_vm9, %v56_v24  }
  0x86   :  { %64 = vst.msk [vmem:[#allocation0] sm:$0x1] %vm63_vm10, %v62_v25  }
  0x88   :  { %v68_v26 = vpop.permute.xlu0 %67   ;;  %v74_v27 = vpop.permute.xlu1 %73  }
  0x89   :  { %70 = vst.msk [vmem:[#allocation0] sm:$0x1] %vm69_vm11, %v68_v26  }
  0x8a   :  { %76 = vst.msk [vmem:[#allocation0] sm:$0x1] %vm75_vm12, %v74_v27  }
  0x8c   :  { %v80_v28 = vpop.permute.xlu0 %79   ;;  %v86_v29 = vpop.permute.xlu1 %85  }
  0x8d   :  { %82 = vst.msk [vmem:[#allocation0] sm:$0x1] %vm81_vm13, %v80_v28  }
  0x8e   :  { %88 = vst.msk [vmem:[#allocation0] sm:$0x1] %vm87_vm14, %v86_v29  }
  0x90   :  { %v92_v30 = vpop.permute.xlu0 %91  }
  0x91   :  { %94 = vst.msk [vmem:[#allocation0] sm:$0x1] %vm93_vm15, %v92_v30  }
  0x98   :  { %v98_v31 = vld [vmem:[#allocation0] sm:$0x1] }
  0x99   :  { %100 = vst [vmem:[%s208_s1] sm:$0x1] %v98_v31 }

// kernel: tile.16
= control target key start
LH: loop header
LB: loop body
LE: loop exit
PB: predicated region body
PF: predicated region fallthrough
CT: control target
= control target key end

     0   :  { %s57_s8 = smov 96   ;;  %vm3_vm0 = vcmask 261120   ;;  %s59_s15 = smov 64   ;;  %vm9_vm1 = vcmask 1048320   ;;  %vm15_vm2 = vcmask 785920   ;;  %vm21_vm3 = vcmask 523520   ;;  %s94_s0 = inlined_call_operand.vmem [shape: f32[16,32], index: 0, kind: input, shape index: {}]   ;;  %s95_s1 = inlined_call_operand.vmem [shape: f32[1,512], index: 1, kind: output, shape index: {}]  }
   0x1   :  { %v48_v0 = vld [vmem:[%s94_s0 + $0x3] ss:$4 sm:$0xf]   ;;  %v49_v1 = vld [vmem:[%s94_s0 + $0x2] ss:$4 sm:$0xf]  }
   0x2   :  { %7 = vrot.lane.b32.xlu0 %v48_v0, %s57_s8  ;;  %v50_v2 = vld [vmem:[%s94_s0 + $0x1] ss:$4 sm:$0xf]   ;;  %v2_v3 = vld [vmem:[%s94_s0] ss:$4 sm:$0xf]  }
   0x3   :  { %s58_s0 = smov 32   ;;  %4 = vst.msk [vmem:[#allocation0] ss:$8 sm:$0xf] %vm3_vm0, %v2_v3  }
   0x4   :  { %19 = vrot.lane.b32.xlu1 %v50_v2, %s58_s0 }
   0x6   :  { %13 = vrot.lane.b32.xlu0 %v49_v1, %s59_s15 }
  0x74   :  { %v8_v4 = vpop.permute.xlu0 %7  }
  0x75   :  { %10 = vst.msk [vmem:[#allocation0] ss:$8 sm:$0xf] %vm9_vm1, %v8_v4  }
  0x76   :  { %v20_v5 = vpop.permute.xlu1 %19  }
  0x78   :  { %v14_v6 = vpop.permute.xlu0 %13  }
  0x79   :  { %16 = vst.msk [vmem:[#allocation0] ss:$8 sm:$0xf] %vm15_vm2, %v14_v6  }
  0x7a   :  { %22 = vst.msk [vmem:[#allocation0] ss:$8 sm:$0xf] %vm21_vm3, %v20_v5  }
  0x81   :  { %v26_v7 = vld [vmem:[#allocation0] sm:$0x1]  ;;  %v30_v8 = vld [vmem:[#allocation0 + $0x8] sm:$0x1]  ;;  %v35_v9 = vld [vmem:[#allocation0 + $0x10] sm:$0x1] }
  0x82   :  { %28 = vst [vmem:[%s95_s1] sm:$0x1] %v26_v7  ;;  %51 = vst [vmem:[%s95_s1 + $0x1] sm:$0x1] %v30_v8  ;;  %v41_v10 = vld [vmem:[#allocation0 + $0x18] sm:$0x1] }
  0x83   :  { %52 = vst [vmem:[%s95_s1 + $0x2] sm:$0x1] %v35_v9  ;;  %53 = vst [vmem:[%s95_s1 + $0x3] sm:$0x1] %v41_v10 }

// kernel: positional_encoder.1
= control target key start
LH: loop header
LB: loop body
LE: loop exit
PB: predicated region body
PF: predicated region fallthrough
CT: control target
= control target key end

     0   :  { %v1188_v1 = vmov 1983009808   ;;  %v31_v3 = vlaneseq  ;;  %v1189_v4 = vmov 1934713408   ;;  %v1190_v12 = vmov 0.0   ;;  %s1192_s11 = smov 64   ;;  %s1601_s0 = inlined_call_operand.vmem [shape: f32[1,16], index: 0, kind: input, shape index: {}]   ;;  %s1602_s1 = inlined_call_operand.vmem [shape: f32[2,512], index: 1, kind: input, shape index: {}]   ;;  %s1603_s2 = inlined_call_operand.vmem [shape: f32[1,512], index: 2, kind: output, shape index: {}]  }
   0x1   :  { %v1110_v0 = vld [vmem:[%s1601_s0] ss:$0 sm:$0xff]  ;;  %v29_v2 = vunpack.c.l.s4 %v1188_v1  ;;  %v44_v5 = vunpack.c.l.s4 %v1189_v4  ;;  %s1191_s0 = smov 32   ;;  %s1193_s12 = smov 96   ;;  %vm173_vm0 = vcmask 261120   ;;  %vm175_vm1 = vcmask 523264  }
   0x2   :  { %21 = vbcast.lane.b32.xlu0 %v1110_v0, 256  ;;  %v1220_v7 = vshrl.u32 %v31_v3, 7  ;;  %v1236_v46 = vld [vmem:[%s1602_s1] ss:$2 sm:$0xf]  ;;  %vm177_vm2 = vcmask 785408  }
   0x3   :  { %v30_v6 = vunpack.c.0.s8 %v29_v2  ;;  %v45_v8 = vunpack.c.0.s8 %v44_v5 }
   0x4   :  { %v191_v45 = vsub.s32 0, %v1220_v7  ;;  %v199_v49 = vsub.s32 2, %v1220_v7  ;;  %v195_v5 = vsub.s32 1, %v1220_v7 }
   0x5   :  { %v33_v9 = vsub.s32 %v30_v6, %v1220_v7  ;;  %v48_v10 = vsub.s32 %v45_v8, %v1220_v7 }
   0x6   :  { %25 = vbcast.lane.b32.xlu0 %v1110_v0, 264  ;;  %v192_v48 = vrot.slane %v1236_v46, %v191_v45  ;;  %v200_v56 = vrot.slane %v1236_v46, %v199_v49 }
  0x74   :  { %v22_v11 = vpop.permute.xlu0 %21 }
  0x75   :  { %v27_v13 = vcombine.high %v22_v11, %v1190_v12  ;;  %v34_v14 = vrot.slane %v22_v11, %v33_v9 }
  0x77   :  { %v41_v15 = vrot.slane %v27_v13, %v33_v9  ;;  %v49_v16 = vrot.slane %v34_v14, %v48_v10  ;;  %v42_v24 = vcombine.high %v34_v14, %v1190_v12 }
  0x78   :  { %v26_v17 = vpop.permute.xlu0 %25 }
  0x79   :  { %v76_v18 = vcombine.high %v26_v17, %v1190_v12  ;;  %v83_v19 = vrot.slane %v26_v17, %v33_v9  ;;  %v1224_v20 = vrot.slane %v41_v15, %v48_v10  ;;  %v72_v21 = vcombine.high %v49_v16, %v1190_v12 }
  0x7a   :  { %v56_v30 = vrot.slane %v42_v24, %v48_v10  ;;  %v57_v31 = vcombine.high %v41_v15, %v1190_v12  ;;  %v196_v15 = vrot.slane %v1236_v46, %v195_v5 }
  0x7b   :  { %v90_v22 = vrot.slane %v76_v18, %v33_v9  ;;  %v98_v23 = vrot.slane %v83_v19, %v48_v10  ;;  %126 = vrot.lane.b32.xlu1 %v72_v21, %s1191_s0  ;;  %v74_v27 = vcombine.high %v1224_v20, %v1190_v12  ;;  %v91_v29 = vcombine.high %v83_v19, %v1190_v12 }
  0x7c   :  { %v71_v34 = vrot.slane %v57_v31, %v48_v10  ;;  %v73_v35 = vcombine.high %v56_v30, %v1190_v12 }
  0x7d   :  { %v1226_v25 = vrot.slane %v90_v22, %v48_v10  ;;  %v121_v26 = vcombine.high %v98_v23, %v1190_v12  ;;  %v105_v32 = vrot.slane %v91_v29, %v48_v10  ;;  %v106_v33 = vcombine.high %v90_v22, %v1190_v12 }
  0x7e   :  { %v75_v38 = vcombine.high %v71_v34, %v1190_v12 }
  0x7f   :  { %150 = vrot.lane.b32.xlu0 %v121_v26, %s1191_s0  ;;  %138 = vrot.lane.b32.xlu1 %v74_v27, %s1191_s0  ;;  %v123_v28 = vcombine.high %v1226_v25, %v1190_v12  ;;  %v120_v36 = vrot.slane %v106_v33, %v48_v10  ;;  %v122_v37 = vcombine.high %v105_v32, %v1190_v12  ;;  %v1195_v26 = vmov 2475754826  }
  0x80   :  { %v1197_v33 = vmov 2102212464  }
  0x81   :  { %v124_v39 = vcombine.high %v120_v36, %v1190_v12 }
  0x83   :  { %130 = vrot.lane.b32.xlu0 %v56_v30, %s1192_s11  ;;  %162 = vrot.lane.b32.xlu1 %v123_v28, %s1191_s0  ;;  %v1196_v30 = vmov 2131351028  }
  0x87   :  { %154 = vrot.lane.b32.xlu0 %v105_v32, %s1192_s11  ;;  %142 = vrot.lane.b32.xlu1 %v71_v34, %s1192_s11 }
  0x8b   :  { %134 = vrot.lane.b32.xlu0 %v73_v35, %s1193_s12  ;;  %166 = vrot.lane.b32.xlu1 %v120_v36, %s1192_s11  ;;  %v1198_v36 = vmov 920167782  }
  0x8f   :  { %158 = vrot.lane.b32.xlu0 %v122_v37, %s1193_s12  ;;  %146 = vrot.lane.b32.xlu1 %v75_v38, %s1193_s12 }
  0x93   :  { %170 = vrot.lane.b32.xlu1 %v124_v39, %s1193_s12  ;;  %v1199_v39 = vmov 1326507024  }
  0xed   :  { %v127_v40 = vpop.permute.xlu1 %126 }
  0xee   :  { %v174_v50 = vsel %vm173_vm0, %v49_v16, %v127_v40 }
  0xf1   :  { %v151_v41 = vpop.permute.xlu0 %150  ;;  %v139_v42 = vpop.permute.xlu1 %138 }
  0xf2   :  { %v182_v57 = vsel %vm173_vm0, %v98_v23, %v151_v41  ;;  %v179_v10 = vsel %vm173_vm0, %v1224_v20, %v139_v42  ;;  %v1194_v23 = vmov 683565275  }
  0xf5   :  { %v131_v43 = vpop.permute.xlu0 %130  ;;  %v1230_v44 = vpop.permute.xlu1 %162 }
  0xf6   :  { %v176_v52 = vsel %vm175_vm1, %v174_v50, %v131_v43 }
  0xf9   :  { %v155_v47 = vpop.permute.xlu0 %154  ;;  %v143_v51 = vpop.permute.xlu1 %142 }
  0xfa   :  { %v183_v58 = vsel %vm175_vm1, %v182_v57, %v155_v47  ;;  %v180_v12 = vsel %vm175_vm1, %v179_v10, %v143_v51 }
  0xfd   :  { %v135_v53 = vpop.permute.xlu0 %134  ;;  %v1249_v61 = vpop.permute.xlu1 %166 }
  0xfe   :  { %v178_v54 = vsel %vm177_vm2, %v176_v52, %v135_v53 }
  0xff   :  { %v1243_v55 = vmul.f32 %v192_v48, %v178_v54 }
 0x101   :  { %v216_v59 = vand.u32 2139095040, %v1243_v55  ;;  %v159_v60 = vpop.permute.xlu0 %158  ;;  %v213_v1 = vand.u32 2147483647, %v1243_v55  ;;  %v147_v9 = vpop.permute.xlu1 %146 }
 0x102   :  { %v184_v62 = vsel %vm177_vm2, %v183_v58, %v159_v60  ;;  %v181_v17 = vsel %vm177_vm2, %v180_v12, %v147_v9 }
 0x103   :  { %v217_v63 = vshrl.u32 %v216_v59, 23  ;;  %v1252_v0 = vmul.f32 %v200_v56, %v184_v62  ;;  %v220_v11 = vand.u32 8388607, %v213_v1  ;;  %v1271_v28 = vmul.f32 %v196_v15, %v181_v17 }
 0x105   :  { %v1111_v2 = vadd.s32 4294967169, %v217_v63  ;;  %v424_v4 = vand.u32 2139095040, %v1252_v0  ;;  %v221_v18 = vor.u32 8388608, %v220_v11  ;;  %v421_v21 = vand.u32 2147483647, %v1252_v0 }
 0x106   :  { %v320_v51 = vand.u32 2139095040, %v1271_v28 }
 0x107   :  { %v223_v6 = vadd.s32 1, %v1111_v2  ;;  %v425_v8 = vshrl.u32 %v424_v4, 23  ;;  %v261_v60 = vshll.u32 %v221_v18, 8  ;;  %v428_v62 = vand.u32 8388607, %v421_v21 }
 0x108   :  { %v321_v63 = vshrl.u32 %v320_v51, 23 }
 0x109   :  { %vm224_vm3 = vcmp.gt.s32.totalorder %v223_v6, 0  ;;  %v1119_v14 = vadd.s32 4294967169, %v425_v8 }
 0x10a   :  { %v225_v13 = vsel %vm224_vm3, %v223_v6, 0 }
 0x10b   :  { %v227_v16 = vand.u32 31, %v225_v13  ;;  %v431_v22 = vadd.s32 1, %v1119_v14  ;;  %v1267_v20 = vshrl.u32 %v225_v13, 5 }
 0x10d   :  { %v1264_v19 = vsub.s32 32, %v227_v16  ;;  %v230_v24 = vshll.u32 %v1194_v23, %v227_v16  ;;  %v233_v27 = vshll.u32 %v1195_v26, %v227_v16  ;;  %v236_v32 = vshll.u32 %v1196_v30, %v227_v16 }
 0x10e   :  { %v239_v35 = vshll.u32 %v1197_v33, %v227_v16  ;;  %v242_v38 = vshll.u32 %v1198_v36, %v227_v16  ;;  %vm432_vm4 = vcmp.gt.s32.totalorder %v431_v22, 0  ;;  %vm245_vm5 = vcmp.lt.s32.totalorder %v1267_v20, 1 }
 0x10f   :  { %v231_v29 = vshrl.u32 %v1195_v26, %v1264_v19  ;;  %v234_v31 = vshrl.u32 %v1196_v30, %v1264_v19  ;;  %v237_v34 = vshrl.u32 %v1197_v33, %v1264_v19  ;;  %v240_v37 = vshrl.u32 %v1198_v36, %v1264_v19 }
 0x110   :  { %v243_v40 = vshrl.u32 %v1199_v39, %v1264_v19  ;;  %v433_v48 = vsel %vm432_vm4, %v431_v22, 0  ;;  %vm248_vm6 = vcmp.lt.s32.totalorder %v1267_v20, 4  ;;  %vm247_vm7 = vcmp.lt.s32.totalorder %v1267_v20, 3 }
 0x111   :  { %v232_v41 = vor.u32 %v231_v29, %v230_v24  ;;  %v235_v42 = vor.u32 %v234_v31, %v233_v27  ;;  %v238_v43 = vor.u32 %v237_v34, %v236_v32  ;;  %v241_v45 = vor.u32 %v240_v37, %v239_v35 }
 0x112   :  { %v244_v47 = vor.u32 %v243_v40, %v242_v38  ;;  %vm246_vm8 = vcmp.lt.s32.totalorder %v1267_v20, 2  ;;  %v435_v57 = vand.u32 31, %v433_v48  ;;  %v1312_v5 = vshrl.u32 %v433_v48, 5 }
 0x113   :  { %v253_v49 = vsel %vm245_vm5, %v232_v41, %v235_v42  ;;  %v257_v50 = vsel %vm245_vm5, %v235_v42, %v238_v43  ;;  %v254_v52 = vsel %vm248_vm6, %v241_v45, 920167782  ;;  %v1115_v22 = vadd.s32 4294967169, %v321_v63 }
 0x114   :  { %v258_v53 = vsel %vm248_vm6, %v244_v47, 1326507024  ;;  %v255_v54 = vsel %vm247_vm7, %v238_v43, %v254_v52  ;;  %v436_v6 = vsub.s32 32, %v435_v57  ;;  %v438_v10 = vshll.u32 %v1194_v23, %v435_v57 }
 0x115   :  { %v259_v56 = vsel %vm247_vm7, %v241_v45, %v258_v53  ;;  %v256_v58 = vsel %vm246_vm8, %v253_v49, %v255_v54  ;;  %v441_v11 = vshll.u32 %v1195_v26, %v435_v57  ;;  %v444_v14 = vshll.u32 %v1196_v30, %v435_v57 }
 0x116   :  { %v260_v59 = vsel %vm246_vm8, %v257_v50, %v259_v56  ;;  %v1314_v8 = vmul.u32.u64.low %v261_v60, %v256_v58  ;;  %v1315_v9 = vmul.u32.u64.high %v261_v60, %v256_v58, %v1314_v8  ;;  %v439_v12 = vshrl.u32 %v1195_v26, %v436_v6 }
 0x117   :  { %v1309_v2 = vmul.u32.u64.low %v261_v60, %v260_v59  ;;  %v1310_v4 = vmul.u32.u64.high %v261_v60, %v260_v59, %v1309_v2  ;;  %v442_v13 = vshrl.u32 %v1196_v30, %v436_v6  ;;  %v445_v15 = vshrl.u32 %v1197_v33, %v436_v6 }
 0x118   :  { %v447_v16 = vshll.u32 %v1197_v33, %v435_v57  ;;  %v448_v17 = vshrl.u32 %v1198_v36, %v436_v6  ;;  %v450_v18 = vshll.u32 %v1198_v36, %v435_v57  ;;  %v440_v24 = vor.u32 %v439_v12, %v438_v10 }
 0x119   :  { %v443_v27 = vor.u32 %v442_v13, %v441_v11  ;;  %v446_v29 = vor.u32 %v445_v15, %v444_v14  ;;  %v451_v31 = vshrl.u32 %v1199_v39, %v436_v6  ;;  %v250_v32 = vsel %vm248_vm6, %v238_v43, 2102212464 }
 0x11a   :  { %v429_v34 = vor.u32 8388608, %v428_v62  ;;  %v449_v35 = vor.u32 %v448_v17, %v447_v16  ;;  %vm453_vm9 = vcmp.lt.s32.totalorder %v1312_v5, 1  ;;  %vm455_vm10 = vcmp.lt.s32.totalorder %v1312_v5, 3 }
 0x11b   :  { %v452_v37 = vor.u32 %v451_v31, %v450_v18  ;;  %vm456_vm11 = vcmp.lt.s32.totalorder %v1312_v5, 4  ;;  %v461_v38 = vsel %vm453_vm9, %v440_v24, %v443_v27  ;;  %v465_v45 = vsel %vm453_vm9, %v443_v27, %v446_v29 }
 0x11c   :  { %v462_v40 = vsel %vm456_vm11, %v449_v35, 920167782  ;;  %v327_v47 = vadd.s32 1, %v1115_v22  ;;  %v229_v43 = vshrl.u32 %v1194_v23, %v1264_v19  ;;  %vm454_vm12 = vcmp.lt.s32.totalorder %v1312_v5, 2 }
 0x11d   :  { %v463_v48 = vsel %vm455_vm10, %v446_v29, %v462_v40  ;;  %v466_v49 = vsel %vm456_vm11, %v452_v37, 1326507024  ;;  %v251_v19 = vsel %vm247_vm7, %v235_v42, %v250_v32  ;;  %v469_v54 = vshll.u32 %v429_v34, 8 }
 0x11e   :  { %v464_v50 = vsel %vm454_vm12, %v461_v38, %v463_v48  ;;  %v467_v51 = vsel %vm455_vm10, %v449_v35, %v466_v49  ;;  %v249_v52 = vsel %vm245_vm5, %v229_v43, %v232_v41  ;;  %v271_v56 = vadd.s32 1, %v1315_v9 }
 0x11f   :  { %v468_v53 = vsel %vm454_vm12, %v465_v45, %v467_v51  ;;  %vm328_vm13 = vcmp.gt.s32.totalorder %v327_v47, 0  ;;  %vm270_vm14 = vc.u32 %v1310_v4, %v1314_v8  ;;  %v252_v41 = vsel %vm246_vm8, %v249_v52, %v251_v19 }
 0x120   :  { %v1359_v57 = vmul.u32.u64.low %v469_v54, %v464_v50  ;;  %v1360_v58 = vmul.u32.u64.high %v469_v54, %v464_v50, %v1359_v57  ;;  %v1365_v59 = vmul.u32.u64.low %v469_v54, %v468_v53  ;;  %v1366_v62 = vmul.u32.u64.high %v469_v54, %v468_v53, %v1365_v59 }
 0x121   :  { %v329_v42 = vsel %vm328_vm13, %v327_v47, 0  ;;  %v272_v63 = vsel %vm270_vm14, %v271_v56, %v1315_v9  ;;  %v268_v2 = vmul.u32 %v261_v60, %v252_v41  ;;  %v458_v10 = vsel %vm456_vm11, %v446_v29, 2102212464  ;;  %v171_v9 = vpop.permute.xlu1 %170 }
 0x122   :  { %v331_v11 = vand.u32 31, %v329_v42  ;;  %v437_v13 = vshrl.u32 %v1194_v23, %v436_v6  ;;  %v459_v20 = vsel %vm455_vm10, %v443_v27, %v458_v10  ;;  %v479_v15 = vadd.s32 1, %v1360_v58 }
 0x123   :  { %v273_v12 = vadd.s32 %v272_v63, %v268_v2  ;;  %v203_v16 = vsub.s32 3, %v1220_v7  ;;  %vm478_vm15 = vc.u32 %v1366_v62, %v1359_v57  ;;  %v185_v17 = vsel %vm173_vm0, %v1226_v25, %v1230_v44 }
 0x124   :  { %v457_v14 = vsel %vm453_vm9, %v437_v13, %v440_v24  ;;  %v332_v60 = vsub.s32 32, %v331_v11  ;;  %v317_v18 = vand.u32 2147483647, %v1271_v28  ;;  %v186_v22 = vsel %vm175_vm1, %v185_v17, %v1249_v61 }
 0x125   :  { %v274_v6 = vadd.s32 536870912, %v273_v12  ;;  %v460_v24 = vsel %vm454_vm12, %v457_v14, %v459_v20  ;;  %v480_v27 = vsel %vm478_vm15, %v479_v15, %v1360_v58  ;;  %v204_v29 = vrot.slane %v1236_v46, %v203_v16 }
 0x126   :  { %v187_v31 = vsel %vm177_vm2, %v186_v22, %v171_v9  ;;  %v335_v32 = vshrl.u32 %v1195_v26, %v332_v60  ;;  %v338_v34 = vshrl.u32 %v1196_v30, %v332_v60  ;;  %v341_v25 = vshrl.u32 %v1197_v33, %v332_v60 }
 0x127   :  { %v344_v44 = vshrl.u32 %v1198_v36, %v332_v60  ;;  %v1395_v35 = vshrl.u32 %v274_v6, 30  ;;  %v476_v61 = vmul.u32 %v469_v54, %v460_v24  ;;  %v324_v5 = vand.u32 8388607, %v317_v18 }
 0x128   :  { %v347_v37 = vshrl.u32 %v1199_v39, %v332_v60  ;;  %v334_v46 = vshll.u32 %v1194_v23, %v331_v11  ;;  %v337_v38 = vshll.u32 %v1195_v26, %v331_v11  ;;  %v340_v40 = vshll.u32 %v1196_v30, %v331_v11 }
 0x129   :  { %v343_v45 = vshll.u32 %v1197_v33, %v331_v11  ;;  %v481_v47 = vadd.s32 %v480_v27, %v476_v61  ;;  %v330_v43 = vshrl.u32 %v329_v42, 5  ;;  %v346_v48 = vshll.u32 %v1198_v36, %v331_v11 }
 0x12a   :  { %v1405_v49 = vmul.f32 %v204_v29, %v187_v31  ;;  %v336_v50 = vor.u32 %v335_v32, %v334_v46  ;;  %v339_v51 = vor.u32 %v338_v34, %v337_v38  ;;  %v342_v52 = vor.u32 %v341_v25, %v340_v40 }
 0x12b   :  { %v345_v19 = vor.u32 %v344_v44, %v343_v45  ;;  %v276_v53 = vshll.u32 %v1395_v35, 30  ;;  %v348_v54 = vor.u32 %v347_v37, %v346_v48  ;;  %v325_v56 = vor.u32 8388608, %v324_v5 }
 0x12c   :  { %v482_v58 = vadd.s32 536870912, %v481_v47  ;;  %vm349_vm0 = vcmp.lt.s32.totalorder %v330_v43, 1  ;;  %vm352_vm1 = vcmp.lt.s32.totalorder %v330_v43, 4  ;;  %v528_v41 = vand.u32 2139095040, %v1405_v49 }
 0x12d   :  { %vm351_vm2 = vcmp.lt.s32.totalorder %v330_v43, 3  ;;  %v357_v59 = vsel %vm349_vm0, %v336_v50, %v339_v51  ;;  %v358_v42 = vsel %vm352_vm1, %v345_v19, 920167782  ;;  %v361_v63 = vsel %vm349_vm0, %v339_v51, %v342_v52 }
 0x12e   :  { %v1411_v2 = vsub.s32 %v273_v12, %v276_v53  ;;  %v359_v10 = vsel %vm351_vm2, %v342_v52, %v358_v42  ;;  %v362_v11 = vsel %vm352_vm1, %v348_v54, 1326507024  ;;  %v333_v13 = vshrl.u32 %v1194_v23, %v332_v60 }
 0x12f   :  { %vm350_vm3 = vcmp.lt.s32.totalorder %v330_v43, 2  ;;  %v354_v14 = vsel %vm352_vm1, %v342_v52, 2102212464  ;;  %v363_v20 = vsel %vm351_vm2, %v345_v19, %v362_v11  ;;  %v365_v9 = vshll.u32 %v325_v56, 8 }
 0x130   :  { %v360_v15 = vsel %vm350_vm3, %v357_v59, %v359_v10  ;;  %v364_v16 = vsel %vm350_vm3, %v361_v63, %v363_v20  ;;  %v529_v17 = vshrl.u32 %v528_v41, 23  ;;  %v1418_v6 = vshrl.u32 %v482_v58, 30 }
 0x131   :  { %v353_v12 = vsel %vm349_vm0, %v333_v13, %v336_v50  ;;  %v355_v22 = vsel %vm351_vm2, %v339_v51, %v354_v14  ;;  %v1422_v24 = vmul.u32.u64.low %v365_v9, %v364_v16  ;;  %v1423_v27 = vmul.u32.u64.high %v365_v9, %v364_v16, %v1422_v24 }
 0x132   :  { %v1123_v60 = vadd.s32 4294967169, %v529_v17  ;;  %v279_v29 = vsub.s32 0, %v1411_v2  ;;  %v1426_v31 = vmul.u32.u64.low %v365_v9, %v360_v15  ;;  %v1427_v32 = vmul.u32.u64.high %v365_v9, %v360_v15, %v1426_v31 }
 0x133   :  { %v484_v25 = vshll.u32 %v1418_v6, 30  ;;  %v356_v44 = vsel %vm350_vm3, %v353_v12, %v355_v22  ;;  %v525_v41 = vand.u32 2147483647, %v1405_v49  ;;  %vm215_vm14 = vcmp.lt.s32.totalorder %v1243_v55, 0 }
 0x134   :  { %v535_v34 = vadd.s32 1, %v1123_v60  ;;  %vm374_vm4 = vc.u32 %v1423_v27, %v1426_v31  ;;  %v1112_v61 = vmin.u32 %v279_v29, %v1411_v2  ;;  %v375_v5 = vadd.s32 1, %v1427_v32 }
 0x135   :  { %v372_v37 = vmul.u32 %v365_v9, %v356_v44  ;;  %v1436_v38 = vsub.s32 %v481_v47, %v484_v25  ;;  %vm1500_vm15 = vcmp.le.f32.partialorder %v213_v1, 0.7853982  ;;  %vm319_vm0 = vcmp.lt.s32.totalorder %v1271_v28, 0 }
 0x136   :  { %vm536_vm5 = vcmp.gt.s32.totalorder %v535_v34, 0  ;;  %v376_v40 = vsel %vm374_vm4, %v375_v5, %v1427_v32  ;;  %v281_v50 = vclz %v1112_v61  ;;  %vm423_vm2 = vcmp.lt.s32.totalorder %v1252_v0, 0 }
 0x137   :  { %v537_v46 = vsel %vm536_vm5, %v535_v34, 0  ;;  %v377_v45 = vadd.s32 %v376_v40, %v372_v37  ;;  %v487_v43 = vsub.s32 0, %v1436_v38  ;;  %vm1520_vm3 = vcmp.le.f32.partialorder %v317_v18, 0.7853982 }
 0x138   :  { %v539_v48 = vand.u32 31, %v537_v46  ;;  %v1113_v53 = vadd.s32 4294967294, %v281_v50  ;;  %v538_v14 = vshrl.u32 %v537_v46, 5  ;;  %vm1532_vm4 = vcmp.le.f32.partialorder %v421_v21, 0.7853982 }
 0x139   :  { %v378_v51 = vadd.s32 536870912, %v377_v45  ;;  %v1120_v56 = vmin.u32 %v487_v43, %v1436_v38 }
 0x13a   :  { %v540_v19 = vsub.s32 32, %v539_v48  ;;  %vm1114_vm6 = vcmp.lt.s32.totalorder %v1113_v53, 0  ;;  %v551_v11 = vshll.u32 %v1197_v33, %v539_v48  ;;  %v554_v15 = vshll.u32 %v1198_v36, %v539_v48 }
 0x13b   :  { %v1440_v52 = vshrl.u32 %v378_v51, 30  ;;  %v489_v13 = vclz %v1120_v56  ;;  %v545_v9 = vshll.u32 %v1195_v26, %v539_v48  ;;  %v284_v12 = vsel %vm1114_vm6, 0, %v1113_v53 }
 0x13c   :  { %v552_v47 = vshrl.u32 %v1198_v36, %v540_v19  ;;  %v555_v59 = vshrl.u32 %v1199_v39, %v540_v19  ;;  %v546_v63 = vshrl.u32 %v1196_v30, %v540_v19  ;;  %v549_v10 = vshrl.u32 %v1197_v33, %v540_v19 }
 0x13d   :  { %v380_v54 = vshll.u32 %v1440_v52, 30  ;;  %v543_v20 = vshrl.u32 %v1195_v26, %v540_v19  ;;  %v548_v39 = vshll.u32 %v1196_v30, %v539_v48  ;;  %v542_v22 = vshll.u32 %v1194_v23, %v539_v48 }
 0x13e   :  { %v553_v17 = vor.u32 %v552_v47, %v551_v11  ;;  %v556_v24 = vor.u32 %v555_v59, %v554_v15  ;;  %v532_v33 = vand.u32 8388607, %v525_v41  ;;  %v547_v29 = vor.u32 %v546_v63, %v545_v9 }
 0x13f   :  { %v1444_v58 = vsub.s32 %v377_v45, %v380_v54  ;;  %v550_v32 = vor.u32 %v549_v10, %v548_v39  ;;  %v1121_v34 = vadd.s32 4294967294, %v489_v13  ;;  %v544_v25 = vor.u32 %v543_v20, %v542_v22 }
 0x140   :  { %vm560_vm7 = vcmp.lt.s32.totalorder %v538_v14, 4  ;;  %v289_v26 = vsub.s32 4294967266, %v284_v12  ;;  %vm557_vm8 = vcmp.lt.s32.totalorder %v538_v14, 1  ;;  %vm559_vm9 = vcmp.lt.s32.totalorder %v538_v14, 3 }
 0x141   :  { %v383_v42 = vsub.s32 0, %v1444_v58  ;;  %v566_v44 = vsel %vm560_vm7, %v553_v17, 920167782  ;;  %v570_v30 = vsel %vm560_vm7, %v556_v24, 1326507024  ;;  %v533_v61 = vor.u32 8388608, %v532_v33 }
 0x142   :  { %v569_v5 = vsel %vm557_vm8, %v547_v29, %v550_v32  ;;  %v571_v37 = vsel %vm559_vm9, %v553_v17, %v570_v30  ;;  %vm1122_vm11 = vcmp.lt.s32.totalorder %v1121_v34, 0  ;;  %v565_v46 = vsel %vm557_vm8, %v544_v25, %v547_v29 }
 0x143   :  { %v1116_v16 = vmin.u32 %v383_v42, %v1444_v58  ;;  %v567_v40 = vsel %vm559_vm9, %v550_v32, %v566_v44  ;;  %vm558_vm12 = vcmp.lt.s32.totalorder %v538_v14, 2  ;;  %v285_v48 = vsub.s32 32, %v284_v12 }
 0x144   :  { %v290_v50 = vadd.s32 127, %v289_v26  ;;  %v562_v51 = vsel %vm560_vm7, %v550_v32, 2102212464  ;;  %v572_v43 = vsel %vm558_vm12, %v569_v5, %v571_v37  ;;  %v492_v53 = vsel %vm1122_vm11, 0, %v1121_v34 }
 0x145   :  { %v385_v60 = vclz %v1116_v16  ;;  %v541_v54 = vshrl.u32 %v1194_v23, %v540_v19  ;;  %v568_v56 = vsel %vm558_vm12, %v565_v46, %v567_v40  ;;  %v573_v47 = vshll.u32 %v533_v61, 8 }
 0x146   :  { %v269_v59 = vadd.s32 %v1314_v8, %v1310_v4  ;;  %v563_v10 = vsel %vm559_vm9, %v547_v29, %v562_v51  ;;  %v291_v20 = vshll.u32 %v290_v50, 23  ;;  %v497_v15 = vsub.s32 4294967266, %v492_v53 }
 0x147   :  { %v1117_v36 = vadd.s32 4294967294, %v385_v60  ;;  %v561_v63 = vsel %vm557_vm8, %v541_v54, %v544_v25  ;;  %v1475_v11 = vmul.u32.u64.low %v573_v47, %v572_v43  ;;  %v1476_v13 = vmul.u32.u64.high %v573_v47, %v572_v43, %v1475_v11 }
 0x148   :  { %v1478_v16 = vmul.u32.u64.low %v573_v47, %v568_v56  ;;  %v1479_v9 = vmul.u32.u64.high %v573_v47, %v568_v56, %v1478_v16  ;;  %v287_v23 = vshrl.u32 %v269_v59, %v285_v48  ;;  %v564_v39 = vsel %vm558_vm12, %v561_v63, %v563_v10 }
 0x149   :  { %vm1118_vm10 = vcmp.lt.s32.totalorder %v1117_v36, 0  ;;  %v286_v17 = vshll.u32 %v1411_v2, %v284_v12  ;;  %v292_v4 = vor.u32 4788187, %v291_v20  ;;  %v498_v8 = vadd.s32 127, %v497_v15 }
 0x14a   :  { %v388_v45 = vsel %vm1118_vm10, 0, %v1117_v36  ;;  %vm582_vm13 = vc.u32 %v1476_v13, %v1478_v16  ;;  %v583_v24 = vadd.s32 1, %v1479_v9  ;;  %v580_v33 = vmul.u32 %v573_v47, %v564_v39 }
 0x14b   :  { %v393_v42 = vsub.s32 4294967266, %v388_v45  ;;  %v389_v22 = vsub.s32 32, %v388_v45  ;;  %v288_v60 = vor.u32 %v287_v23, %v286_v17  ;;  %v493_v29 = vsub.s32 32, %v492_v53 }
 0x14c   :  { %v373_v32 = vadd.s32 %v1426_v31, %v1423_v27  ;;  %v584_v25 = vsel %vm582_vm13, %v583_v24, %v1479_v9  ;;  %v293_v36 = vand.u32 2147483647, %v292_v4  ;;  %v477_v2 = vadd.s32 %v1359_v57, %v1366_v62 }
 0x14d   :  { %v394_v19 = vadd.s32 127, %v393_v42  ;;  %v585_v14 = vadd.s32 %v584_v25, %v580_v33  ;;  %v499_v12 = vshll.u32 %v498_v8, 23  ;;  %v295_v30 = vcvt.s32.f32 %v288_v60 }
 0x14e   :  { %v391_v44 = vshrl.u32 %v373_v32, %v389_v22  ;;  %v495_v61 = vshrl.u32 %v477_v2, %v493_v29  ;;  %v390_v5 = vshll.u32 %v1444_v58, %v388_v45  ;;  %v494_v27 = vshll.u32 %v1436_v38, %v492_v53 }
 0x14f   :  { %v395_v34 = vshll.u32 %v394_v19, 23  ;;  %v586_v26 = vadd.s32 536870912, %v585_v14  ;;  %v296_v40 = vmul.f32 %v295_v30, %v293_v36  ;;  %v500_v31 = vor.u32 4788187, %v499_v12 }
 0x150   :  { %v392_v48 = vor.u32 %v391_v44, %v390_v5  ;;  %v496_v51 = vor.u32 %v495_v61, %v494_v27  ;;  %v299_v11 = vsub.s32 4, %v1395_v35  ;;  %v581_v39 = vadd.s32 %v1478_v16, %v1476_v13 }
 0x151   :  { %v396_v37 = vor.u32 4788187, %v395_v34  ;;  %v1491_v46 = vshrl.u32 %v586_v26, 30  ;;  %v297_v62 = vxor.u32 2147483648, %v296_v40  ;;  %v501_v54 = vand.u32 2147483647, %v500_v31 }
 0x152   :  { %v399_v56 = vcvt.s32.f32 %v392_v48  ;;  %v503_v59 = vcvt.s32.f32 %v496_v51  ;;  %v300_v19 = vsel %vm215_vm14, %v299_v11, %v1395_v35  ;;  %v507_v24 = vsub.s32 4, %v1418_v6 }
 0x153   :  { %v588_v50 = vshll.u32 %v1491_v46, 30  ;;  %v397_v43 = vand.u32 2147483647, %v396_v37  ;;  %v298_v45 = vsel %vm215_vm14, %v297_v62, %v296_v40  ;;  %v302_v13 = vsel %vm1500_vm15, 0, %v300_v19 }
 0x154   :  { %v504_v38 = vmul.f32 %v503_v59, %v501_v54  ;;  %v301_v20 = vsel %vm1500_vm15, %v1243_v55, %v298_v45  ;;  %v1200_v32 = vmov 1966171168   ;;  %v403_v25 = vsub.s32 4, %v1440_v52 }
 0x155   :  { %v589_v57 = vsub.s32 %v585_v14, %v588_v50  ;;  %v400_v42 = vmul.f32 %v399_v56, %v397_v43  ;;  %1172 = vcosq.f32 %v301_v20  ;;  %v1048_v34 = vunpack.c.l.s4 %v1200_v32 }
 0x156   :  { %v505_v9 = vxor.u32 2147483648, %v504_v38  ;;  %1174 = vsinq.f32 %v301_v20  ;;  %v306_v2 = vadd.s32 3, %v302_v13  ;;  %v508_v21 = vsel %vm423_vm2, %v507_v24, %v1418_v6 }
 0x157   :  { %v591_v47 = vsub.s32 0, %v589_v57  ;;  %v401_v10 = vxor.u32 2147483648, %v400_v42  ;;  %v1049_v44 = vunpack.c.0.s8 %v1048_v34  ;;  %v404_v26 = vsel %vm319_vm0, %v403_v25, %v1440_v52 }
 0x158   :  { %v506_v4 = vsel %vm423_vm2, %v505_v9, %v504_v38  ;;  %v722_v61 = vand.u32 3, %v302_v13  ;;  %v510_v5 = vsel %vm1532_vm4, 0, %v508_v21  ;;  %v307_v31 = vand.u32 3, %v306_v2 }
 0x159   :  { %v1124_v58 = vmin.u32 %v591_v47, %v589_v57  ;;  %v402_v1 = vsel %vm319_vm0, %v401_v10, %v400_v42  ;;  %v509_v29 = vsel %vm1532_vm4, %v1252_v0, %v506_v4  ;;  %v406_v6 = vsel %vm1520_vm3, 0, %v404_v26 }
 0x15a   :  { %v405_v35 = vsel %vm1520_vm3, %v1271_v28, %v402_v1  ;;  %v611_v50 = vsub.s32 4, %v1491_v46  ;;  %v514_v43 = vadd.s32 3, %v510_v5  ;;  %vm723_vm5 = vcmp.lt.s32.totalorder %v722_v61, 2 }
 0x15b   :  { %v593_v53 = vclz %v1124_v58  ;;  %1176 = vcosq.f32 %v405_v35  ;;  %vm527_vm6 = vcmp.lt.s32.totalorder %v1405_v49, 0  ;;  %vm312_vm7 = vcmp.eq.s32.totalorder %v307_v31, 2 }
 0x15c   :  { %1178 = vsinq.f32 %v405_v35  ;;  %vm724_vm8 = vcmp.eq.s32.totalorder %v722_v61, 0  ;;  %vm727_vm9 = vcmp.eq.s32.totalorder %v722_v61, 2  ;;  %v410_v54 = vadd.s32 3, %v406_v6 }
 0x15d   :  { %v1125_v15 = vadd.s32 4294967294, %v593_v53  ;;  %1180 = vcosq.f32 %v509_v29  ;;  %v928_v47 = vand.u32 3, %v510_v5  ;;  %vm1557_vm10 = vcmp.le.f32.partialorder %v525_v41, 0.7853982 }
 0x15e   :  { %1182 = vsinq.f32 %v509_v29  ;;  %vm309_vm11 = vcmp.eq.s32.totalorder %v307_v31, 0  ;;  %v515_v38 = vand.u32 3, %v514_v43  ;;  %vm305_vm12 = vweird.f32 %v1243_v55 }
 0x15f   :  { %vm1126_vm1 = vcmp.lt.s32.totalorder %v1125_v15, 0  ;;  %v1173_v30 = vpop.eup %1172  ;;  %v825_v9 = vand.u32 3, %v406_v6  ;;  %vm308_vm13 = vcmp.lt.s32.totalorder %v307_v31, 2  ;;  %vm930_vm14 = vcmp.eq.s32.totalorder %v928_v47, 0 }
 0x160   :  { %v596_v23 = vsel %vm1126_vm1, 0, %v1125_v15  ;;  %v1175_v27 = vpop.eup %1174  ;;  %v313_v51 = vxor.u32 2147483648, %v1173_v30  ;;  %v411_v15 = vand.u32 3, %v410_v54  ;;  %vm517_vm15 = vcmp.eq.s32.totalorder %v515_v38, 0 }
 0x161   :  { %v597_v17 = vsub.s32 32, %v596_v23  ;;  %v601_v22 = vsub.s32 4294967266, %v596_v23  ;;  %v598_v18 = vshll.u32 %v589_v57, %v596_v23  ;;  %v1552_v57 = vsub.s32 %v1049_v44, %v1220_v7 }
 0x162   :  { %v310_v52 = vxor.u32 2147483648, %v1175_v27  ;;  %v612_v7 = vsel %vm527_vm6, %v611_v50, %v1491_v46  ;;  %v314_v45 = vsel %vm312_vm7, %v313_v51, %v1175_v27  ;;  %v729_v20 = vsel %vm727_vm9, %v313_v51, %v1175_v27 }
 0x163   :  { %v599_v60 = vshrl.u32 %v581_v39, %v597_v17  ;;  %v602_v33 = vadd.s32 127, %v601_v22  ;;  %v614_v46 = vsel %vm1557_vm10, 0, %v612_v7  ;;  %vm520_vm0 = vcmp.eq.s32.totalorder %v515_v38, 2 }
 0x164   :  { %v311_v10 = vsel %vm309_vm11, %v1173_v30, %v310_v52  ;;  %v726_v11 = vsel %vm724_vm8, %v1173_v30, %v310_v52  ;;  %vm933_vm1 = vcmp.eq.s32.totalorder %v928_v47, 2  ;;  %v618_v8 = vadd.s32 3, %v614_v46 }
 0x165   :  { %v600_v14 = vor.u32 %v599_v60, %v598_v18  ;;  %v603_v36 = vshll.u32 %v602_v33, 23  ;;  %v1177_v56 = vpop.eup %1176  ;;  %v315_v39 = vsel %vm308_vm13, %v311_v10, %v314_v45  ;;  %v730_v17 = vsel %vm723_vm5, %v726_v11, %v729_v20 }
 0x166   :  { %v1179_v58 = vpop.eup %1178  ;;  %v417_v23 = vxor.u32 2147483648, %v1177_v56  ;;  %vm413_vm2 = vcmp.eq.s32.totalorder %v411_v15, 0  ;;  %vm416_vm3 = vcmp.eq.s32.totalorder %v411_v15, 2  ;;  %vm827_vm4 = vcmp.eq.s32.totalorder %v825_v9, 0 }
 0x167   :  { %v604_v12 = vor.u32 4788187, %v603_v36  ;;  %v607_v40 = vcvt.s32.f32 %v600_v14  ;;  %v1181_v63 = vpop.eup %1180  ;;  %v414_v1 = vxor.u32 2147483648, %v1179_v58  ;;  %vm513_vm7 = vweird.f32 %v1252_v0 }
 0x168   :  { %v1183_v41 = vpop.eup %1182  ;;  %v521_v19 = vxor.u32 2147483648, %v1181_v63  ;;  %v418_v24 = vsel %vm416_vm3, %v417_v23, %v1179_v58  ;;  %vm412_vm8 = vcmp.lt.s32.totalorder %v411_v15, 2  ;;  %vm826_vm9 = vcmp.lt.s32.totalorder %v825_v9, 2 }
 0x169   :  { %v605_v37 = vand.u32 2147483647, %v604_v12  ;;  %v518_v4 = vxor.u32 2147483648, %v1183_v41  ;;  %v415_v22 = vsel %vm413_vm2, %v1177_v56, %v414_v1  ;;  %v829_v35 = vsel %vm827_vm4, %v1177_v56, %v414_v1  ;;  %v1109_v56 = vld [vmem:[%s1602_s1 + $0x1] ss:$2 sm:$0xf] }
 0x16a   :  { %v522_v13 = vsel %vm520_vm0, %v521_v19, %v1183_v41  ;;  %v1031_v16 = vand.u32 3, %v614_v46  ;;  %v935_v29 = vsel %vm933_vm1, %v521_v19, %v1183_v41  ;;  %v619_v32 = vand.u32 3, %v618_v8 }
 0x16b   :  { %v608_v48 = vmul.f32 %v607_v40, %v605_v37  ;;  %v519_v18 = vsel %vm517_vm15, %v1181_v63, %v518_v4  ;;  %v932_v33 = vsel %vm930_vm14, %v1181_v63, %v518_v4  ;;  %vm409_vm5 = vweird.f32 %v1271_v28 }
 0x16c   :  { %v419_v34 = vsel %vm412_vm8, %v415_v22, %v418_v24  ;;  %v316_v36 = vsel %vm305_vm12, nan, %v315_v39  ;;  %v731_v2 = vsel %vm305_vm12, nan, %v730_v17  ;;  %vm516_vm11 = vcmp.lt.s32.totalorder %v515_v38, 2 }
 0x16d   :  { %v609_v62 = vxor.u32 2147483648, %v608_v48  ;;  %vm929_vm13 = vcmp.lt.s32.totalorder %v928_v47, 2  ;;  %v523_v12 = vsel %vm516_vm11, %v519_v18, %v522_v13  ;;  %vm1036_vm14 = vcmp.eq.s32.totalorder %v1031_v16, 2 }
 0x16e   :  { %v936_v44 = vsel %vm929_vm13, %v932_v33, %v935_v29  ;;  %v420_v30 = vsel %vm409_vm5, nan, %v419_v34  ;;  %vm624_vm15 = vcmp.eq.s32.totalorder %v619_v32, 2  ;;  %vm621_vm0 = vcmp.eq.s32.totalorder %v619_v32, 0 }
 0x16f   :  { %v610_v42 = vsel %vm527_vm6, %v609_v62, %v608_v48  ;;  %vm830_vm6 = vcmp.eq.s32.totalorder %v825_v9, 2  ;;  %vm1033_vm1 = vcmp.eq.s32.totalorder %v1031_v16, 0  ;;  %vm620_vm2 = vcmp.lt.s32.totalorder %v619_v32, 2 }
 0x170   :  { %v613_v53 = vsel %vm1557_vm10, %v1405_v49, %v610_v42  ;;  %v832_v60 = vsel %vm830_vm6, %v417_v23, %v1179_v58  ;;  %vm617_vm10 = vweird.f32 %v1405_v49  ;;  %vm1032_vm3 = vcmp.lt.s32.totalorder %v1031_v16, 2 }
 0x171   :  { %1184 = vcosq.f32 %v613_v53  ;;  %v833_v25 = vsel %vm826_vm9, %v829_v35, %v832_v60  ;;  %v1045_v27 = vcombine.low %v316_v36, %v420_v30  ;;  %v524_v50 = vsel %vm513_vm7, nan, %v523_v12 }
 0x172   :  { %1186 = vsinq.f32 %v613_v53  ;;  %v834_v28 = vsel %vm409_vm5, nan, %v833_v25  ;;  %v937_v51 = vsel %vm513_vm7, nan, %v936_v44  ;;  %vm15_vm12 = vcmp.gt.f32.partialorder %v1109_v56, 0.5 }
 0x173   :  { %v1074_v31 = vcombine.low %v731_v2, %v834_v28  ;;  %v1053_v47 = vrot.slane %v1045_v27, %v1552_v57  ;;  %vm1102_vm4 = vcmp.lt.s32.totalorder %v31_v3, 512 }
 0x175   :  { %v1082_v59 = vrot.slane %v1074_v31, %v1552_v57 }
 0x17b   :  { %v1185_v14 = vpop.eup %1184 }
 0x17c   :  { %v1187_v21 = vpop.eup %1186  ;;  %v625_v26 = vxor.u32 2147483648, %v1185_v14 }
 0x17d   :  { %v622_v61 = vxor.u32 2147483648, %v1187_v21 }
 0x17e   :  { %v626_v5 = vsel %vm624_vm15, %v625_v26, %v1187_v21  ;;  %v1038_v37 = vsel %vm1036_vm14, %v625_v26, %v1187_v21 }
 0x17f   :  { %v623_v40 = vsel %vm621_vm0, %v1185_v14, %v622_v61  ;;  %v1035_v55 = vsel %vm1033_vm1, %v1185_v14, %v622_v61 }
 0x180   :  { %v627_v6 = vsel %vm620_vm2, %v623_v40, %v626_v5  ;;  %v1039_v48 = vsel %vm1032_vm3, %v1035_v55, %v1038_v37 }
 0x181   :  { %v628_v43 = vsel %vm617_vm10, nan, %v627_v6  ;;  %v1040_v52 = vsel %vm617_vm10, nan, %v1039_v48 }
 0x182   :  { %v1046_v62 = vcombine.low %v524_v50, %v628_v43  ;;  %v1075_v54 = vcombine.low %v937_v51, %v1040_v52 }
 0x184   :  { %v1060_v42 = vrot.slane %v1046_v62, %v1552_v57  ;;  %v1089_v0 = vrot.slane %v1075_v54, %v1552_v57 }
 0x186   :  { %v1061_v7 = vcombine.low %v1053_v47, %v1060_v42  ;;  %v1090_v58 = vcombine.low %v1082_v59, %v1089_v0 }
 0x188   :  { %v1068_v49 = vrot.slane %v1061_v7, %v1552_v57  ;;  %v1097_v45 = vrot.slane %v1090_v58, %v1552_v57 }
 0x18a   :  { %v1099_v38 = vsel %vm15_vm12, %v1068_v49, %v1097_v45 }
 0x18b   :  { %1104 = vst.msk [vmem:[%s1603_s2] sm:$0xf] %vm1102_vm4, %v1099_v38 }

</bundles_post_ra>
